<compile_context>
chip_gen: v6e
topology: v6e:2x2x1
jax: 0.10.0
libtpu: 0.0.40
codegen_flags: <defaults>
</compile_context>

<pallas_src>
import functools

import jax
import jax.numpy as jnp
from jax.experimental import pallas as pl
from jax.experimental.pallas import tpu as pltpu

LAYER_NORM_EPS = 1e-12
_VMEM_LIMIT_BYTES = 48 * 1024 * 1024   # > v5e 16MiB default, < v7x 64MiB phys.


def _round_up(x, m):
    return ((x + m - 1) // m) * m


# ---------------------------------------------------------------------------
# Kernel 1: prediction-head transform (dense -> ReLU -> LayerNorm), one token
# tile per grid step.  h is stored at the decoder weight's dtype so bf16
# weights give a pure-bf16 decoder matmul.
# ---------------------------------------------------------------------------
def _transform_kernel(x_ref, wd_ref, bd_ref, g_ref, b_ref, h_ref):
    x = x_ref[...].astype(wd_ref.dtype)               # match MXU operand dtype
    h = jnp.dot(x, wd_ref[...], preferred_element_type=jnp.float32)
    h = h + bd_ref[...].astype(jnp.float32)
    h = jnp.maximum(h, 0.0)                           # relu
    # LayerNorm in f32 (eps = 1e-12 is below bf16 resolution).
    mean = jnp.mean(h, axis=-1, keepdims=True)
    centered = h - mean
    var = jnp.mean(centered * centered, axis=-1, keepdims=True)
    h = centered * jax.lax.rsqrt(var + LAYER_NORM_EPS)
    h = h * g_ref[...].astype(jnp.float32) + b_ref[...].astype(jnp.float32)
    h_ref[...] = h.astype(h_ref.dtype)


# ---------------------------------------------------------------------------
# Kernel 2: decoder GEMM, one (tm, tn) logits tile: [tm, H] @ [H, tn] + bias.
# ---------------------------------------------------------------------------
def _decoder_kernel(h_ref, w_ref, b_ref, o_ref):
    logits = jnp.dot(h_ref[...], w_ref[...], preferred_element_type=jnp.float32)
    logits = logits + b_ref[...].astype(jnp.float32)
    o_ref[...] = logits.astype(o_ref.dtype)


def pad_decoder_params(w_dec, b_vocab, *, tn=2048):
    """One-time (parameter-load-time) vocab padding.

    Pads the vocab axis of w_dec / b_vocab to a multiple of the vocab tile so
    the per-call wrapper never has to copy the decoder weight through HBM.
    Padded bias columns are filled with a large negative value so downstream
    softmax ignores them even if the caller keeps the padded logits.
    """
    V = w_dec.shape[1]
    tn_eff = min(tn, _round_up(V, 128))
    Vp = _round_up(V, tn_eff)
    b_vocab = jnp.asarray(b_vocab).reshape(1, -1)
    if Vp != V:
        w_dec = jnp.pad(w_dec, ((0, 0), (0, Vp - V)))
        b_vocab = jnp.pad(b_vocab, ((0, 0), (0, Vp - V)), constant_values=-1e9)
    return w_dec, b_vocab


@functools.partial(jax.jit,
                   static_argnames=("vocab_size", "tm", "tn", "out_dtype"))
def mobilebert_lm_prediction_head(x, w_dense, b_dense, ln_gamma, ln_beta,
                                  w_dec, b_vocab, *, vocab_size=None,
                                  tm=None, tn=2048, out_dtype=None):
    """MobileBERT LM prediction head.

    x: [T, H] flattened hidden states; w_dense: [H, H]; w_dec: [H, V]
    (x @ W convention, i.e. PyTorch weight transposed); biases / LN params
    may be [H] / [V] or [1, H] / [1, V].
    vocab_size: true vocab size if w_dec/b_vocab were pre-padded with
    pad_decoder_params(); defaults to w_dec.shape[1].
    Weights may be f32 or bf16; MXU operands use the weight dtype, LayerNorm
    and bias math stay f32.  out_dtype defaults to x.dtype (use bf16 logits
    when the consumer accepts it).
    """
    T, H = x.shape
    Vp_in = w_dec.shape[1]
    V = Vp_in if vocab_size is None else vocab_size
    out_dtype = x.dtype if out_dtype is None else out_dtype

    b_dense = b_dense.reshape(1, H)
    ln_gamma = ln_gamma.reshape(1, H)
    ln_beta = ln_beta.reshape(1, H)
    b_vocab = b_vocab.reshape(1, Vp_in)

    # Token tile: multiple of 256 for the v6e/v7x MXU; big enough to sit past
    # the decoder-weight HBM ridge; clamped (sublane multiple of 8) for tiny T.
    if tm is None:
        tm = 1024 if T >= 2048 else 512
    tm_eff = min(tm, _round_up(T, 8))
    Tp = _round_up(T, tm_eff)

    # Vocab tile: lane-dense multiple of 128; large to amortize per-step cost.
    tn_eff = min(tn, _round_up(Vp_in, 128))
    Vp = _round_up(Vp_in, tn_eff)

    if Tp != T:
        x = jnp.pad(x, ((0, Tp - T), (0, 0)))
    if Vp != Vp_in:
        # Prefer pad_decoder_params() at load time so this per-call copy of
        # the decoder weight is never hit for real vocab sizes.
        w_dec = jnp.pad(w_dec, ((0, 0), (0, Vp - Vp_in)))
        b_vocab = jnp.pad(b_vocab, ((0, 0), (0, Vp - Vp_in)))

    h_dtype = w_dec.dtype
    x_bytes = jnp.dtype(x.dtype).itemsize
    h_bytes = jnp.dtype(h_dtype).itemsize
    w_bytes = jnp.dtype(w_dec.dtype).itemsize
    out_bytes = jnp.dtype(out_dtype).itemsize

    # --- Kernel 1: transform (dense + relu + LayerNorm) --------------------
    h = pl.pallas_call(
        _transform_kernel,
        out_shape=jax.ShapeDtypeStruct((Tp, H), h_dtype),
        grid_spec=pltpu.PrefetchScalarGridSpec(
            num_scalar_prefetch=0,
            grid=(Tp // tm_eff,),
            in_specs=[
                pl.BlockSpec((tm_eff, H), lambda i: (i, 0)),   # x tile
                pl.BlockSpec((H, H), lambda i: (0, 0)),        # dense weight
                pl.BlockSpec((1, H), lambda i: (0, 0)),        # dense bias
                pl.BlockSpec((1, H), lambda i: (0, 0)),        # LN gamma
                pl.BlockSpec((1, H), lambda i: (0, 0)),        # LN beta
            ],
            out_specs=pl.BlockSpec((tm_eff, H), lambda i: (i, 0)),
        ),
        compiler_params=pltpu.CompilerParams(
            dimension_semantics=("parallel",),
            vmem_limit_bytes=_VMEM_LIMIT_BYTES),
        cost_estimate=pl.CostEstimate(
            flops=2 * Tp * H * H,
            transcendentals=Tp,
            bytes_accessed=Tp * H * x_bytes + H * H * w_bytes
                           + Tp * H * h_bytes),
    )(x, w_dense, b_dense, ln_gamma, ln_beta)

    # --- Kernel 2: decoder, vocab-outer / token-inner grid ------------------
    # Weight tile block index depends only on j -> the full decoder weight is
    # streamed from HBM exactly once; the small h[T, H] is re-streamed per
    # vocab tile instead.  No reduction axis -> both axes "parallel" so v7x
    # megacore can split the vocab loop across its 2 TensorCores.
    n_vtiles = Vp // tn_eff
    logits = pl.pallas_call(
        _decoder_kernel,
        out_shape=jax.ShapeDtypeStruct((Tp, Vp), out_dtype),
        grid_spec=pltpu.PrefetchScalarGridSpec(
            num_scalar_prefetch=0,
            grid=(n_vtiles, Tp // tm_eff),
            in_specs=[
                pl.BlockSpec((tm_eff, H), lambda j, i: (i, 0)),    # h tile
                pl.BlockSpec((H, tn_eff), lambda j, i: (0, j)),    # weight tile
                pl.BlockSpec((1, tn_eff), lambda j, i: (0, j)),    # bias tile
            ],
            out_specs=pl.BlockSpec((tm_eff, tn_eff), lambda j, i: (i, j)),
        ),
        compiler_params=pltpu.CompilerParams(
            dimension_semantics=("parallel", "parallel"),
            vmem_limit_bytes=_VMEM_LIMIT_BYTES),
        cost_estimate=pl.CostEstimate(
            flops=2 * Tp * H * Vp,
            transcendentals=0,
            bytes_accessed=(H * Vp * w_bytes                 # weights, once
                            + Tp * H * h_bytes * n_vtiles    # h re-streamed
                            + Tp * Vp * out_bytes)),         # logits out
    )(h, w_dec, b_vocab)

    if Tp != T:
        logits = logits[:T]
    if Vp != V:
        logits = logits[:, :V]
    return logits


if __name__ == "__main__":
    # Small MobileBERT-like config; shapes chosen to also exercise the
    # T / V padding + slicing path and the tile clamping.
    batch, seq = 2, 7        # T = 14  -> padded to 16 tokens
    hidden = 128             # hidden_size (lane-dense)
    vocab = 300              # vocab_size -> padded to 384 columns

    key = jax.random.PRNGKey(0)
    k_x, k_wd, k_bd, k_wdec = jax.random.split(key, 4)

    # Inputs: [batch, seq, hidden] -> flatten to [T, H] (glue in plain JAX).
    hidden_states = jax.random.normal(k_x, (batch, seq, hidden), jnp.float32)
    x2d = hidden_states.reshape(batch * seq, hidden)

    # Deterministic synthetic parameters (shapes from the module __init__).
    # TODO(synk): set_sample_config / get_active_subnet (NAS sub-net slicing)
    # is training-time config machinery, not part of the forward pass.
    w_dense = jax.random.normal(k_wd, (hidden, hidden), jnp.float32) * 0.02
    b_dense = jax.random.normal(k_bd, (hidden,), jnp.float32) * 0.02
    ln_gamma = jnp.ones((hidden,), jnp.float32)
    ln_beta = jnp.zeros((hidden,), jnp.float32)
    w_dec = jax.random.normal(k_wdec, (hidden, vocab), jnp.float32) * 0.02
    b_vocab = jnp.zeros((vocab,), jnp.float32)   # nn.Parameter(torch.zeros(V))

    out = mobilebert_lm_prediction_head(
        x2d, w_dense, b_dense, ln_gamma, ln_beta, w_dec, b_vocab)
    out = out.reshape(batch, seq, vocab)
    jax.block_until_ready(out)

    # Reference check in plain JAX (same math, f32).
    h = x2d @ w_dense + b_dense[None, :]
    h = jnp.maximum(h, 0.0)
    mean = jnp.mean(h, axis=-1, keepdims=True)
    var = jnp.mean((h - mean) ** 2, axis=-1, keepdims=True)
    h = (h - mean) / jnp.sqrt(var + LAYER_NORM_EPS)
    h = h * ln_gamma[None, :] + ln_beta[None, :]
    ref = (h @ w_dec + b_vocab[None, :]).reshape(batch, seq, vocab)
    assert jnp.allclose(out, ref, atol=1e-4, rtol=1e-4), "mismatch vs reference"

    # Also exercise the intended production path: vocab pre-padded at
    # parameter-load time so the jitted call never pads the decoder weight.
    w_dec_p, b_voc_p = pad_decoder_params(w_dec, b_vocab, tn=2048)
    out2 = mobilebert_lm_prediction_head(
        x2d, w_dense, b_dense, ln_gamma, ln_beta, w_dec_p, b_voc_p,
        vocab_size=vocab)
    jax.block_until_ready(out2)
    assert jnp.allclose(out2.reshape(batch, seq, vocab), ref,
                        atol=1e-4, rtol=1e-4), "mismatch (pre-padded path)"

    print("KERNEL_OK")
</pallas_src>

<mosaic_0001>
module attributes {stable_mosaic.version = 11 : i64} {
  func.func @_transform_kernel(%arg0: i32, %arg1: memref<16x128xf32, #tpu.memory_space<vmem>>, %arg2: memref<128x128xf32, #tpu.memory_space<vmem>>, %arg3: memref<1x128xf32, #tpu.memory_space<vmem>>, %arg4: memref<1x128xf32, #tpu.memory_space<vmem>>, %arg5: memref<1x128xf32, #tpu.memory_space<vmem>>, %arg6: memref<16x128xf32, #tpu.memory_space<vmem>>) attributes {dimension_semantics = [#tpu.dimension_semantics<parallel>], iteration_bounds = array<i64: 1>, scalar_prefetch = 0 : i64, scratch_operands = 0 : i64, tpu.core_type = #tpu.core_type<tc>, window_params = [{transform_indices = @transform_0, window_bounds = array<i64: 16, 128>}, {pipeline_mode = #tpu.pipeline_mode<synchronous>, transform_indices = @transform_1, window_bounds = array<i64: 128, 128>}, {pipeline_mode = #tpu.pipeline_mode<synchronous>, transform_indices = @transform_2, window_bounds = array<i64: 1, 128>}, {pipeline_mode = #tpu.pipeline_mode<synchronous>, transform_indices = @transform_3, window_bounds = array<i64: 1, 128>}, {pipeline_mode = #tpu.pipeline_mode<synchronous>, transform_indices = @transform_4, window_bounds = array<i64: 1, 128>}, {transform_indices = @transform_5, window_bounds = array<i64: 16, 128>}]} {
    %c0 = arith.constant 0 : index
    %c0_0 = arith.constant 0 : index
    %0 = vector.load %arg1[%c0, %c0_0] : memref<16x128xf32, #tpu.memory_space<vmem>>, vector<16x128xf32>
    %c0_1 = arith.constant 0 : index
    %c0_2 = arith.constant 0 : index
    %1 = vector.load %arg2[%c0_1, %c0_2] : memref<128x128xf32, #tpu.memory_space<vmem>>, vector<128x128xf32>
    %cst = arith.constant dense<0.000000e+00> : vector<16x128xf32>
    %2 = tpu.matmul %0, %1, %cst {dimension_numbers = #tpu.dot_dimension_numbers<[1], [0], [0], [1], [0, 0, 1, 1], [], []>} : vector<16x128xf32>, vector<128x128xf32>, vector<16x128xf32> -> vector<16x128xf32>
    %c0_3 = arith.constant 0 : index
    %c0_4 = arith.constant 0 : index
    %3 = vector.load %arg3[%c0_3, %c0_4] : memref<1x128xf32, #tpu.memory_space<vmem>>, vector<1x128xf32>
    %4 = vector.broadcast %3 : vector<1x128xf32> to vector<16x128xf32>
    %5 = arith.addf %2, %4 : vector<16x128xf32>
    %cst_5 = arith.constant 0.000000e+00 : f32
    %6 = vector.broadcast %cst_5 : f32 to vector<16x128xf32>
    %7 = arith.maximumf %5, %6 : vector<16x128xf32>
    %cst_6 = arith.constant dense<0.000000e+00> : vector<16xf32>
    %8 = vector.multi_reduction <add>, %7, %cst_6 [1] : vector<16x128xf32> to vector<16xf32>
    %9 = vector.shape_cast %8 : vector<16xf32> to vector<16x1xf32>
    %cst_7 = arith.constant 1.280000e+02 : f32
    %10 = vector.broadcast %cst_7 : f32 to vector<16x1xf32>
    %11 = arith.divf %9, %10 : vector<16x1xf32>
    %12 = vector.broadcast %11 : vector<16x1xf32> to vector<16x128xf32>
    %13 = arith.subf %7, %12 : vector<16x128xf32>
    %14 = arith.mulf %13, %13 : vector<16x128xf32>
    %cst_8 = arith.constant dense<0.000000e+00> : vector<16xf32>
    %15 = vector.multi_reduction <add>, %14, %cst_8 [1] : vector<16x128xf32> to vector<16xf32>
    %16 = vector.shape_cast %15 : vector<16xf32> to vector<16x1xf32>
    %cst_9 = arith.constant 1.280000e+02 : f32
    %17 = vector.broadcast %cst_9 : f32 to vector<16x1xf32>
    %18 = arith.divf %16, %17 : vector<16x1xf32>
    %cst_10 = arith.constant 9.99999996E-13 : f32
    %19 = vector.broadcast %cst_10 : f32 to vector<16x1xf32>
    %20 = arith.addf %18, %19 : vector<16x1xf32>
    %21 = math.rsqrt %20 : vector<16x1xf32>
    %22 = vector.broadcast %21 : vector<16x1xf32> to vector<16x128xf32>
    %23 = arith.mulf %13, %22 : vector<16x128xf32>
    %c0_11 = arith.constant 0 : index
    %c0_12 = arith.constant 0 : index
    %24 = vector.load %arg4[%c0_11, %c0_12] : memref<1x128xf32, #tpu.memory_space<vmem>>, vector<1x128xf32>
    %25 = vector.broadcast %24 : vector<1x128xf32> to vector<16x128xf32>
    %26 = arith.mulf %23, %25 : vector<16x128xf32>
    %c0_13 = arith.constant 0 : index
    %c0_14 = arith.constant 0 : index
    %27 = vector.load %arg5[%c0_13, %c0_14] : memref<1x128xf32, #tpu.memory_space<vmem>>, vector<1x128xf32>
    %28 = vector.broadcast %27 : vector<1x128xf32> to vector<16x128xf32>
    %29 = arith.addf %26, %28 : vector<16x128xf32>
    %c0_15 = arith.constant 0 : index
    %c0_16 = arith.constant 0 : index
    %30 = vector.load %arg6[%c0_15, %c0_16] : memref<16x128xf32, #tpu.memory_space<vmem>>, vector<16x128xf32>
    tpu.vector_store %arg6[%c0_15, %c0_16], %29 {strides = array<i32>} : memref<16x128xf32, #tpu.memory_space<vmem>>, vector<16x128xf32>,
    return
  }
  func.func @transform_0(%arg0: i32) -> (i32, i32) {
    %c0_i32 = arith.constant 0 : i32
    %c0_i32_0 = arith.constant 0 : i32
    return %arg0, %c0_i32 : i32, i32
  }
  func.func @transform_1(%arg0: i32) -> (i32, i32) {
    %c0_i32 = arith.constant 0 : i32
    %c0_i32_0 = arith.constant 0 : i32
    %c0_i32_1 = arith.constant 0 : i32
    return %c0_i32, %c0_i32_0 : i32, i32
  }
  func.func @transform_2(%arg0: i32) -> (i32, i32) {
    %c0_i32 = arith.constant 0 : i32
    %c0_i32_0 = arith.constant 0 : i32
    %c0_i32_1 = arith.constant 0 : i32
    return %c0_i32, %c0_i32_0 : i32, i32
  }
  func.func @transform_3(%arg0: i32) -> (i32, i32) {
    %c0_i32 = arith.constant 0 : i32
    %c0_i32_0 = arith.constant 0 : i32
    %c0_i32_1 = arith.constant 0 : i32
    return %c0_i32, %c0_i32_0 : i32, i32
  }
  func.func @transform_4(%arg0: i32) -> (i32, i32) {
    %c0_i32 = arith.constant 0 : i32
    %c0_i32_0 = arith.constant 0 : i32
    %c0_i32_1 = arith.constant 0 : i32
    return %c0_i32, %c0_i32_0 : i32, i32
  }
  func.func @transform_5(%arg0: i32) -> (i32, i32) {
    %c0_i32 = arith.constant 0 : i32
    %c0_i32_0 = arith.constant 0 : i32
    return %arg0, %c0_i32 : i32, i32
  }
}

module attributes {stable_mosaic.version = 11 : i64} {
  func.func @_decoder_kernel(%arg0: i32, %arg1: i32, %arg2: memref<16x128xf32, #tpu.memory_space<vmem>>, %arg3: memref<128x384xf32, #tpu.memory_space<vmem>>, %arg4: memref<1x384xf32, #tpu.memory_space<vmem>>, %arg5: memref<16x384xf32, #tpu.memory_space<vmem>>) attributes {dimension_semantics = [#tpu.dimension_semantics<parallel>, #tpu.dimension_semantics<parallel>], iteration_bounds = array<i64: 1, 1>, scalar_prefetch = 0 : i64, scratch_operands = 0 : i64, tpu.core_type = #tpu.core_type<tc>, window_params = [{transform_indices = @transform_0, window_bounds = array<i64: 16, 128>}, {transform_indices = @transform_1, window_bounds = array<i64: 128, 384>}, {transform_indices = @transform_2, window_bounds = array<i64: 1, 384>}, {transform_indices = @transform_3, window_bounds = array<i64: 16, 384>}]} {
    %c0 = arith.constant 0 : index
    %c0_0 = arith.constant 0 : index
    %0 = vector.load %arg2[%c0, %c0_0] : memref<16x128xf32, #tpu.memory_space<vmem>>, vector<16x128xf32>
    %c0_1 = arith.constant 0 : index
    %c0_2 = arith.constant 0 : index
    %1 = vector.load %arg3[%c0_1, %c0_2] : memref<128x384xf32, #tpu.memory_space<vmem>>, vector<128x384xf32>
    %cst = arith.constant dense<0.000000e+00> : vector<16x384xf32>
    %2 = tpu.matmul %0, %1, %cst {dimension_numbers = #tpu.dot_dimension_numbers<[1], [0], [0], [1], [0, 0, 1, 1], [], []>} : vector<16x128xf32>, vector<128x384xf32>, vector<16x384xf32> -> vector<16x384xf32>
    %c0_3 = arith.constant 0 : index
    %c0_4 = arith.constant 0 : index
    %3 = vector.load %arg4[%c0_3, %c0_4] : memref<1x384xf32, #tpu.memory_space<vmem>>, vector<1x384xf32>
    %4 = vector.broadcast %3 : vector<1x384xf32> to vector<16x384xf32>
    %5 = arith.addf %2, %4 : vector<16x384xf32>
    %c0_5 = arith.constant 0 : index
    %c0_6 = arith.constant 0 : index
    %6 = vector.load %arg5[%c0_5, %c0_6] : memref<16x384xf32, #tpu.memory_space<vmem>>, vector<16x384xf32>
    tpu.vector_store %arg5[%c0_5, %c0_6], %5 {strides = array<i32>} : memref<16x384xf32, #tpu.memory_space<vmem>>, vector<16x384xf32>,
    return
  }
  func.func @transform_0(%arg0: i32, %arg1: i32) -> (i32, i32) {
    %c0_i32 = arith.constant 0 : i32
    %c0_i32_0 = arith.constant 0 : i32
    return %arg1, %c0_i32 : i32, i32
  }
  func.func @transform_1(%arg0: i32, %arg1: i32) -> (i32, i32) {
    %c0_i32 = arith.constant 0 : i32
    %c0_i32_0 = arith.constant 0 : i32
    return %c0_i32, %arg0 : i32, i32
  }
  func.func @transform_2(%arg0: i32, %arg1: i32) -> (i32, i32) {
    %c0_i32 = arith.constant 0 : i32
    %c0_i32_0 = arith.constant 0 : i32
    return %c0_i32, %arg0 : i32, i32
  }
  func.func @transform_3(%arg0: i32, %arg1: i32) -> (i32, i32) {
    %c0_i32 = arith.constant 0 : i32
    return %arg1, %arg0 : i32, i32
  }
}

</mosaic_0001>

<bundles_post_ra>
// kernel: mobilebert_lm_prediction_head.2
= control target key start
LH: loop header
LB: loop body
LE: loop exit
PB: predicated region body
PF: predicated region fallthrough
CT: control target
= control target key end

     0   :  { %s328_s1 = inlined_call_operand.vmem [shape: f32[128,128], index: 1, kind: input, shape index: {}]   ;;  %s329_s0 = inlined_call_operand.vmem [shape: f32[16,128], index: 0, kind: input, shape index: {}]   ;;  %s330_s2 = inlined_call_operand.vmem [shape: f32[1,128], index: 2, kind: input, shape index: {}]   ;;  %s331_s3 = inlined_call_operand.vmem [shape: f32[1,128], index: 3, kind: input, shape index: {}]   ;;  %s332_s4 = inlined_call_operand.vmem [shape: f32[1,128], index: 4, kind: input, shape index: {}]   ;;  %s333_s5 = inlined_call_operand.vmem [shape: f32[16,128], index: 5, kind: output, shape index: {}]  }
   0x1   :  { %v37_v0 = vld [vmem:[%s328_s1 + $0x78] sm:$0xff]  ;;  %v36_v1 = vld [vmem:[%s328_s1 + $0x70] sm:$0xff]  ;;  %v35_v2 = vld [vmem:[%s328_s1 + $0x68] sm:$0xff] }
   0x2   :  { %190 = vmatprep.subr.mxu0 %v37_v0  ;;  %v34_v3 = vld [vmem:[%s328_s1 + $0x60] sm:$0xff]  ;;  %v33_v5 = vld [vmem:[%s328_s1 + $0x58] sm:$0xff]  ;;  %v32_v6 = vld [vmem:[%s328_s1 + $0x50] sm:$0xff] }
   0x3   :  { %191 = vmatpush3.msra.mxu0 %v37_v0  ;;  %v20_v4 = vld [vmem:[%s329_s0] sm:$0xff]  ;;  %v31_v7 = vld [vmem:[%s328_s1 + $0x48] sm:$0xff]  ;;  %v29_v9 = vld [vmem:[%s328_s1 + $0x38] sm:$0xff] }
   0x4   :  { %192 = vmatprep.subr.mxu0 %v36_v1  ;;  %222 = vmatprep.mubr.f32.mxu0 %v20_v4  ;;  %v30_v8 = vld [vmem:[%s328_s1 + $0x40] sm:$0xff]  ;;  %v28_v10 = vld [vmem:[%s328_s1 + $0x30] sm:$0xff]  ;;  %v27_v11 = vld [vmem:[%s328_s1 + $0x28] sm:$0xff] }
   0x5   :  { %193 = vmatpush3.msra.mxu0 %v36_v1  ;;  %v26_v12 = vld [vmem:[%s328_s1 + $0x20] sm:$0xff]  ;;  %v25_v13 = vld [vmem:[%s328_s1 + $0x18] sm:$0xff]  ;;  %v24_v14 = vld [vmem:[%s328_s1 + $0x10] sm:$0xff] }
   0x6   :  { %194 = vmatprep.subr.mxu0 %v35_v2  ;;  %v23_v15 = vld [vmem:[%s328_s1 + $0x8] sm:$0xff]  ;;  %v22_v16 = vld [vmem:[%s328_s1] sm:$0xff] }
   0x7   :  { %195 = vmatpush3.msra.mxu0 %v35_v2  ;;  %v21_v17 = vld [vmem:[%s329_s0 + $0x8] sm:$0xff]  ;;  %v169_v19 = vld [vmem:[%s330_s2] ss:$0 sm:$0xff] }
   0x8   :  { %196 = vmatprep.subr.mxu0 %v34_v3  ;;  %v170_v40 = vld [vmem:[%s331_s3] ss:$0 sm:$0xff] }
   0x9   :  { %197 = vmatpush3.msra.mxu0 %v34_v3  ;;  %v171_v42 = vld [vmem:[%s332_s4] ss:$0 sm:$0xff] }
   0xa   :  { %198 = vmatprep.subr.mxu0 %v33_v5 }
   0xb   :  { %199 = vmatpush3.msra.mxu0 %v33_v5 }
   0xc   :  { %200 = vmatprep.subr.mxu0 %v32_v6 }
   0xd   :  { %201 = vmatpush3.msra.mxu0 %v32_v6 }
   0xe   :  { %202 = vmatprep.subr.mxu0 %v31_v7 }
   0xf   :  { %203 = vmatpush3.msra.mxu0 %v31_v7 }
  0x10   :  { %204 = vmatprep.subr.mxu0 %v30_v8 }
  0x11   :  { %205 = vmatpush3.msra.mxu0 %v30_v8 }
  0x12   :  { %206 = vmatprep.subr.mxu0 %v29_v9 }
  0x13   :  { %207 = vmatpush3.msra.mxu0 %v29_v9 }
  0x14   :  { %208 = vmatprep.subr.mxu0 %v28_v10 }
  0x15   :  { %209 = vmatpush3.msra.mxu0 %v28_v10 }
  0x16   :  { %210 = vmatprep.subr.mxu0 %v27_v11 }
  0x17   :  { %211 = vmatpush3.msra.mxu0 %v27_v11 }
  0x18   :  { %212 = vmatprep.subr.mxu0 %v26_v12 }
  0x19   :  { %213 = vmatpush3.msra.mxu0 %v26_v12 }
  0x1a   :  { %214 = vmatprep.subr.mxu0 %v25_v13 }
  0x1b   :  { %215 = vmatpush3.msra.mxu0 %v25_v13 }
  0x1c   :  { %216 = vmatprep.subr.mxu0 %v24_v14 }
  0x1d   :  { %217 = vmatpush3.msra.mxu0 %v24_v14 }
  0x1e   :  { %218 = vmatprep.subr.mxu0 %v23_v15 }
  0x1f   :  { %219 = vmatpush3.msra.mxu0 %v23_v15 }
  0x20   :  { %220 = vmatprep.subr.mxu0 %v22_v16 }
  0x21   :  { %221 = vmatpush3.msra.mxu0 %v22_v16 }
  0x22   :  { %223 = vmatmul.mubr.f32.vlgmr.msra.gmra.mxu0 %v21_v17 }
  0xe2   :  { %v224_v18 = vpop.f32.mrf.mxu0 }
  0xe3   :  { %v117_v22 = vadd.f32 %v224_v18, %v169_v19 }
  0xe4   :  { %v111_v20 = vpop.f32.mrf.mxu0 }
  0xe5   :  { %v112_v21 = vadd.f32 %v169_v19, %v111_v20  ;;  %v121_v24 = vmax.f32 %v117_v22, 0.0 }
  0xe7   :  { %v120_v23 = vmax.f32 %v112_v21, 0.0 }
  0xe9   :  { %122 = vadd.xlane.f32.xlu0 %v120_v23 }
  0xed   :  { %124 = vadd.xlane.f32.xlu0 %v121_v24 }
 0x172   :  { %v123_v25 = vpop.xlane.xlu0 %122 }
 0x173   :  { %v127_v26 = vmul.f32 0.0078125, %v123_v25 }
 0x175   :  { %v129_v27 = vsub.f32 %v120_v23, %v127_v26 }
 0x176   :  { %v125_v28 = vpop.xlane.xlu0 %124 }
 0x177   :  { %v128_v29 = vmul.f32 0.0078125, %v125_v28  ;;  %v131_v30 = vmul.f32 %v129_v27, %v129_v27 }
 0x179   :  { %v130_v31 = vsub.f32 %v121_v24, %v128_v29  ;;  %133 = vadd.xlane.f32.xlu1 %v131_v30 }
 0x17b   :  { %v132_v32 = vmul.f32 %v130_v31, %v130_v31 }
 0x17d   :  { %135 = vadd.xlane.f32.xlu1 %v132_v32 }
 0x202   :  { %v134_v33 = vpop.xlane.xlu1 %133 }
 0x203   :  { %v137_v34 = vmul.f32 0.0078125, %v134_v33 }
 0x205   :  { %v139_v35 = vadd.f32 1e-12, %v137_v34 }
 0x206   :  { %v136_v36 = vpop.xlane.xlu1 %135 }
 0x207   :  { %225 = vrsqrt.f32 %v139_v35  ;;  %v138_v37 = vmul.f32 0.0078125, %v136_v36 }
 0x209   :  { %v140_v38 = vadd.f32 1e-12, %v138_v37 }
 0x20b   :  { %227 = vrsqrt.f32 %v140_v38 }
 0x214   :  { %v226_v39 = vpop.eup %225 }
 0x215   :  { %v143_v41 = vmul.f32 %v226_v39, %v129_v27 }
 0x217   :  { %v152_v43 = vmul.f32 %v170_v40, %v143_v41 }
 0x218   :  { %v228_v44 = vpop.eup %227 }
 0x219   :  { %v161_v45 = vadd.f32 %v171_v42, %v152_v43  ;;  %v144_v46 = vmul.f32 %v228_v44, %v130_v31 }
 0x21b   :  { %163 = vst [vmem:[%s333_s5] sm:$0xff] %v161_v45  ;;  %v153_v47 = vmul.f32 %v170_v40, %v144_v46 }
 0x21d   :  { %v162_v48 = vadd.f32 %v171_v42, %v153_v47 }
 0x21f   :  { %164 = vst [vmem:[%s333_s5 + $0x8] sm:$0xff] %v162_v48 }

// kernel: mobilebert_lm_prediction_head.3
= control target key start
LH: loop header
LB: loop body
LE: loop exit
PB: predicated region body
PF: predicated region fallthrough
CT: control target
= control target key end

     0   :  { %v335_v5 = vmov 0.0   ;;  %s517_s0 = inlined_call_operand.vmem [shape: f32[16,128], index: 0, kind: input, shape index: {}]   ;;  %s518_s1 = inlined_call_operand.vmem [shape: f32[128,384], index: 1, kind: input, shape index: {}]   ;;  %s519_s2 = inlined_call_operand.vmem [shape: f32[1,384], index: 2, kind: input, shape index: {}]   ;;  %s520_s3 = inlined_call_operand.hbm [shape: f32[16,384], index: 3, kind: output, shape index: {}]  }
   0x1   :  { %v63_v0 = vld [vmem:[%s518_s1 + $0x170] sm:$0xff]  ;;  %v62_v1 = vld [vmem:[%s518_s1 + $0x168] sm:$0xff]  ;;  %v60_v2 = vld [vmem:[%s518_s1 + $0x158] sm:$0xff]  ;;  %146 = vmatprep.mubr.f32.mxu0 %v335_v5 }
   0x2   :  { %82 = vmatprep.subr.mxu0 %v63_v0  ;;  %v64_v3 = vld [vmem:[%s518_s1 + $0x178] sm:$0xff]  ;;  %v59_v4 = vld [vmem:[%s518_s1 + $0x150] sm:$0xff]  ;;  %v57_v6 = vld [vmem:[%s518_s1 + $0x140] sm:$0xff] }
   0x3   :  { %83 = vmatpush1.msra.mxu0 %v62_v1  ;;  %274 = vmatprep.subr.mxu1 %v64_v3  ;;  %v61_v7 = vld [vmem:[%s518_s1 + $0x160] sm:$0xff]  ;;  %v56_v8 = vld [vmem:[%s518_s1 + $0x138] sm:$0xff]  ;;  %v58_v9 = vld [vmem:[%s518_s1 + $0x148] sm:$0xff] }
   0x4   :  { %84 = vmatprep.subr.mxu0 %v60_v2  ;;  %275 = vmatpush3.msra.mxu1 %v64_v3  ;;  %v54_v10 = vld [vmem:[%s518_s1 + $0x128] sm:$0xff]  ;;  %v53_v11 = vld [vmem:[%s518_s1 + $0x120] sm:$0xff]  ;;  %v55_v12 = vld [vmem:[%s518_s1 + $0x130] sm:$0xff] }
   0x5   :  { %85 = vmatpush1.msra.mxu0 %v59_v4  ;;  %276 = vmatprep.subr.mxu1 %v61_v7  ;;  %v51_v13 = vld [vmem:[%s518_s1 + $0x110] sm:$0xff]  ;;  %v50_v14 = vld [vmem:[%s518_s1 + $0x108] sm:$0xff]  ;;  %v52_v15 = vld [vmem:[%s518_s1 + $0x118] sm:$0xff] }
   0x6   :  { %86 = vmatprep.subr.mxu0 %v57_v6  ;;  %277 = vmatpush3.msra.mxu1 %v61_v7  ;;  %v48_v16 = vld [vmem:[%s518_s1 + $0xf8] sm:$0xff]  ;;  %v47_v17 = vld [vmem:[%s518_s1 + $0xf0] sm:$0xff]  ;;  %v49_v18 = vld [vmem:[%s518_s1 + $0x100] sm:$0xff] }
   0x7   :  { %87 = vmatpush1.msra.mxu0 %v56_v8  ;;  %278 = vmatprep.subr.mxu1 %v58_v9  ;;  %v45_v19 = vld [vmem:[%s518_s1 + $0xe0] sm:$0xff]  ;;  %v44_v20 = vld [vmem:[%s518_s1 + $0xd8] sm:$0xff]  ;;  %v46_v21 = vld [vmem:[%s518_s1 + $0xe8] sm:$0xff] }
   0x8   :  { %88 = vmatprep.subr.mxu0 %v54_v10  ;;  %279 = vmatpush3.msra.mxu1 %v58_v9  ;;  %v42_v22 = vld [vmem:[%s518_s1 + $0xc8] sm:$0xff]  ;;  %v41_v23 = vld [vmem:[%s518_s1 + $0xc0] sm:$0xff]  ;;  %v43_v24 = vld [vmem:[%s518_s1 + $0xd0] sm:$0xff] }
   0x9   :  { %89 = vmatpush1.msra.mxu0 %v53_v11  ;;  %280 = vmatprep.subr.mxu1 %v55_v12  ;;  %v39_v25 = vld [vmem:[%s518_s1 + $0xb0] sm:$0xff]  ;;  %v38_v26 = vld [vmem:[%s518_s1 + $0xa8] sm:$0xff]  ;;  %v40_v27 = vld [vmem:[%s518_s1 + $0xb8] sm:$0xff] }
   0xa   :  { %90 = vmatprep.subr.mxu0 %v51_v13  ;;  %281 = vmatpush3.msra.mxu1 %v55_v12  ;;  %v36_v28 = vld [vmem:[%s518_s1 + $0x98] sm:$0xff]  ;;  %v35_v29 = vld [vmem:[%s518_s1 + $0x90] sm:$0xff]  ;;  %v37_v30 = vld [vmem:[%s518_s1 + $0xa0] sm:$0xff] }
   0xb   :  { %91 = vmatpush1.msra.mxu0 %v50_v14  ;;  %282 = vmatprep.subr.mxu1 %v52_v15 }
   0xc   :  { %92 = vmatprep.subr.mxu0 %v48_v16  ;;  %283 = vmatpush3.msra.mxu1 %v52_v15 }
   0xd   :  { %93 = vmatpush1.msra.mxu0 %v47_v17  ;;  %284 = vmatprep.subr.mxu1 %v49_v18 }
   0xe   :  { %94 = vmatprep.subr.mxu0 %v45_v19  ;;  %285 = vmatpush3.msra.mxu1 %v49_v18 }
   0xf   :  { %95 = vmatpush1.msra.mxu0 %v44_v20  ;;  %286 = vmatprep.subr.mxu1 %v46_v21 }
  0x10   :  { %96 = vmatprep.subr.mxu0 %v42_v22  ;;  %287 = vmatpush3.msra.mxu1 %v46_v21 }
  0x11   :  { %97 = vmatpush1.msra.mxu0 %v41_v23  ;;  %288 = vmatprep.subr.mxu1 %v43_v24 }
  0x12   :  { %98 = vmatprep.subr.mxu0 %v39_v25  ;;  %289 = vmatpush3.msra.mxu1 %v43_v24 }
  0x13   :  { %8 = vsyncpa [#allocation3], 0  ;;  %99 = vmatpush1.msra.mxu0 %v38_v26  ;;  %290 = vmatprep.subr.mxu1 %v40_v27  ;;  %v33_v31 = vld [vmem:[%s518_s1 + $0x80] sm:$0xff]  ;;  %v32_v32 = vld [vmem:[%s518_s1 + $0x78] sm:$0xff]  ;;  %v67_v51 = vlaneseq }
  0x14   :  { %100 = vmatprep.subr.mxu0 %v36_v28  ;;  %291 = vmatpush3.msra.mxu1 %v40_v27  ;;  %v34_v33 = vld [vmem:[%s518_s1 + $0x88] sm:$0xff]  ;;  %v29_v35 = vld [vmem:[%s518_s1 + $0x60] sm:$0xff]  ;;  %v31_v36 = vld [vmem:[%s518_s1 + $0x70] sm:$0xff] }
  0x15   :  { %101 = vmatpush1.msra.mxu0 %v35_v29  ;;  %292 = vmatprep.subr.mxu1 %v37_v30  ;;  %v30_v34 = vld [vmem:[%s518_s1 + $0x68] sm:$0xff]  ;;  %v27_v37 = vld [vmem:[%s518_s1 + $0x50] sm:$0xff]  ;;  %v28_v39 = vld [vmem:[%s518_s1 + $0x58] sm:$0xff]  ;;  %v68_v52 = vshrl.u32 %v67_v51, 7 }
  0x16   :  { %102 = vmatprep.subr.mxu0 %v33_v31  ;;  %293 = vmatpush3.msra.mxu1 %v37_v30  ;;  %v26_v38 = vld [vmem:[%s518_s1 + $0x48] sm:$0xff]  ;;  %v24_v40 = vld [vmem:[%s518_s1 + $0x38] sm:$0xff]  ;;  %v23_v41 = vld [vmem:[%s518_s1 + $0x30] sm:$0xff] }
  0x17   :  { %103 = vmatpush1.msra.mxu0 %v32_v32  ;;  %294 = vmatprep.subr.mxu1 %v34_v33  ;;  %v25_v42 = vld [vmem:[%s518_s1 + $0x40] sm:$0xff]  ;;  %v20_v44 = vld [vmem:[%s518_s1 + $0x18] sm:$0xff]  ;;  %v22_v45 = vld [vmem:[%s518_s1 + $0x28] sm:$0xff]  ;;  %v69_v53 = vsub.s32 0, %v68_v52  ;;  %v73_v55 = vsub.s32 1, %v68_v52  ;;  %v77_v56 = vsub.s32 2, %v68_v52 }
  0x18   :  { %104 = vmatprep.subr.mxu0 %v30_v34  ;;  %295 = vmatpush3.msra.mxu1 %v34_v33  ;;  %v21_v43 = vld [vmem:[%s518_s1 + $0x20] sm:$0xff]  ;;  %v18_v46 = vld [vmem:[%s518_s1 + $0x8] sm:$0xff]  ;;  %v19_v48 = vld [vmem:[%s518_s1 + $0x10] sm:$0xff] }
  0x19   :  { %105 = vmatpush1.msra.mxu0 %v29_v35  ;;  %296 = vmatprep.subr.mxu1 %v31_v36  ;;  %v17_v47 = vld [vmem:[%s518_s1] sm:$0xff]  ;;  %v16_v50 = vld [vmem:[%s517_s0 + $0x8] sm:$0xff] }
  0x1a   :  { %106 = vmatprep.subr.mxu0 %v27_v37  ;;  %297 = vmatpush3.msra.mxu1 %v31_v36  ;;  %v15_v49 = vld [vmem:[%s517_s0] sm:$0xff]  ;;  %s336_s0 = smov [#allocation2]  }
  0x1b   :  { %107 = vmatpush1.msra.mxu0 %v26_v38  ;;  %298 = vmatprep.subr.mxu1 %v28_v39  ;;  %v65_v54 = vld [vmem:[%s519_s2] sm:$0x7]  ;;  %s245_s5 = sshll.u32 %s336_s0, 4  ;;  %s246_s5 = int_to_ptr.vmem [resolvable:$true] %s245_s5 }
  0x1c   :  { %108 = vmatprep.subr.mxu0 %v24_v40  ;;  %299 = vmatpush3.msra.mxu1 %v28_v39  ;;  %v70_v57 = vrot.slane %v65_v54, %v69_v53  ;;  %v74_v58 = vrot.slane %v65_v54, %v73_v55  ;;  %v78_v59 = vrot.slane %v65_v54, %v77_v56  ;;  %s313_s2 = scalar_lea.vmem %s246_s5, 768  ;;  %p318_p1 = scmp.lt.s32.totalorder %s246_s5, %s246_s5 }
  0x1d   :  { %109 = vmatpush1.msra.mxu0 %v23_v41  ;;  %300 = vmatprep.subr.mxu1 %v25_v42  ;;  %p314_p0 = scmp.ne.s32.totalorder %s246_s5, %s313_s2  ;;  %p319_p2 = scmp.lt.s32.totalorder %s313_s2, %s313_s2 }
  0x1e   :  { %110 = vmatprep.subr.mxu0 %v21_v43  ;;  %301 = vmatpush3.msra.mxu1 %v25_v42 }
  0x1f   :  { %111 = vmatpush1.msra.mxu0 %v20_v44  ;;  %302 = vmatprep.subr.mxu1 %v22_v45  ;;  %p320_p3 = por %p319_p2, %p318_p1 }
  0x20   :  { %112 = vmatprep.subr.mxu0 %v18_v46  ;;  %303 = vmatpush3.msra.mxu1 %v22_v45 }
  0x21   :  { %113 = vmatpush1.msra.mxu0 %v17_v47  ;;  %304 = vmatprep.subr.mxu1 %v19_v48  ;;  %p321_p4 = pnand %p320_p3, %p314_p0 }
  0x22   :  { %147 = vmatmul.mubr.f32.vlgmr.msra.gmra.mxu0 %v15_v49  ;;  %305 = vmatpush3.msra.mxu1 %v19_v48 }
  0x23   :  { %306 = vmatprep.mubr.f32.mxu1 %v15_v49  ;;  %152 = vmatprep.mubr.f32.mxu0 %v335_v5 }
  0x24   :  { %307 = vmatmul.mubr.f32.vlgmr.msra.gmra.mxu1 %v16_v50 }
  0x26   :  { %153 = vmatmul.mubr.f32.gmra.mxu0 %v16_v50 }
  0xe2   :  { %v148_v60 = vpop.f32.mrf.mxu0 }
  0xe3   :  { %v149_v61 = vadd.f32 %v148_v60, %v70_v57 }
  0xe4   :  { %v150_v62 = vpop.f32.mrf.mxu0  ;;  %v308_v63 = vpop.f32.mrf.mxu1 }
  0xe5   :  { %234 = vst [vmem:[#allocation2] sm:$0xff] %v149_v61  ;;  %v151_v0 = vadd.f32 %v150_v62, %v74_v58  ;;  %v231_v1 = vadd.f32 %v308_v63, %v78_v59 }
  0xe6   :  { %v154_v2 = vpop.f32.mrf.mxu0  ;;  %v225_v3 = vpop.f32.mrf.mxu1 }
  0xe7   :  { %235 = vst [vmem:[#allocation2 + $0x8] sm:$0xff] %v151_v0  ;;  %239 = vst [vmem:[#allocation2 + $0x28] sm:$0xff] %v231_v1  ;;  %v155_v4 = vadd.f32 %v154_v2, %v70_v57  ;;  %v226_v5 = vadd.f32 %v225_v3, %v78_v59 }
  0xe8   :  { %v156_v6 = vpop.f32.mrf.mxu0 }
  0xe9   :  { %237 = vst [vmem:[#allocation2 + $0x18] sm:$0xff] %v155_v4  ;;  %236 = vst [vmem:[#allocation2 + $0x10] sm:$0xff] %v226_v5  ;;  %v157_v7 = vadd.f32 %v156_v6, %v74_v58 }
  0xeb   :  { %238 = vst [vmem:[#allocation2 + $0x20] sm:$0xff] %v157_v7 }
  0xec   :  { %324 = shalt.err (!%p321_p4)
}
  0xed   :  { %s337_s6 = smov 384   ;;  %s338_s7 = smov 24  }
  0xee   :  { %251 = dma.vmem_to_hbm [thread:$0]  %s246_s5, 768, %s520_s3, [#allocation3], %s337_s6, %s337_s6, %s338_s7  }
  0xef   :  { %333 = dma.done.wait [#allocation3], 768  }
  0xf0   :  { %334 = vsyncadd [#allocation3], 4294966528 }
  0xf1   :  { %255 = vsyncpa [#allocation3], 1 }

</bundles_post_ra>
